<compile_context>
chip_gen: v5e
topology: v5e:2x2
jax: 0.10.0
libtpu: 0.0.40
codegen_flags: <defaults>
</compile_context>

<pallas_src>
import math
import functools

import jax
import jax.numpy as jnp
from jax import lax
from jax.experimental import pallas as pl
from jax.experimental.pallas import tpu as pltpu


def _device_kind():
    try:
        return jax.devices()[0].device_kind.lower()
    except Exception:
        return ""


_KIND = _device_kind()
_IS_V7 = ("v7" in _KIND) or ("7x" in _KIND)
# v5e/v5p/v4/... have no bf16 VALUs -> keep the wide select/add chain in fp32 there.
_HAS_BF16_VPU = not any(t in _KIND for t in ("v2", "v3", "v4", "v5"))
# v7x has 64 MiB VMEM/TC -> smaller scoped cap; v5e/v6e have 128 MiB physical.
_VMEM_LIMIT = (40 if _IS_V7 else 64) * 1024 * 1024
_S_DTYPE = jnp.bfloat16 if _HAS_BF16_VPU else jnp.float32


def _ceil_to(x, m):
    return ((x + m - 1) // m) * m


def _pad2d(a, rows, cols):
    r, c = a.shape
    if r == rows and c == cols:
        return a
    return jnp.pad(a, ((0, rows - r), (0, cols - c)))


# ---------------------------------------------------------------------------
# Tiled linear projection kernels (bf16 MXU operands, fp32 accumulation)
# ---------------------------------------------------------------------------

def _linear_kernel_1k(x_ref, w_ref, b_ref, o_ref):
    # K fits a single tile: straight dot + bias, no scratch / init / finalize.
    o_ref[...] = (jnp.dot(x_ref[...], w_ref[...],
                          preferred_element_type=jnp.float32)
                  + b_ref[...]).astype(o_ref.dtype)


def _linear_kernel_acc(x_ref, w_ref, b_ref, o_ref, acc_ref):
    k = pl.program_id(2)

    @pl.when(k == 0)
    def _init():
        acc_ref[...] = jnp.zeros_like(acc_ref)

    acc_ref[...] += jnp.dot(x_ref[...], w_ref[...],
                            preferred_element_type=jnp.float32)

    @pl.when(k == pl.num_programs(2) - 1)
    def _finalize():
        o_ref[...] = (acc_ref[...] + b_ref[...]).astype(o_ref.dtype)


def linear(x2d, w, b, *, tm=1024, tn=512, tk=1024, out_dtype=jnp.float32):
    """(M, K) @ (K, Dout) + b -> (M, Dout). bf16 MXU matmul, fp32 accumulate."""
    M, K = x2d.shape
    Dout = w.shape[1]
    tm = min(tm, _ceil_to(M, 8))
    tn = min(tn, _ceil_to(Dout, 128))
    tk = min(tk, _ceil_to(K, 128))
    Mp, Kp, Np = _ceil_to(M, tm), _ceil_to(K, tk), _ceil_to(Dout, tn)

    # Cast to bf16 BEFORE padding: MXU is bf16-native on all gens and the pad copy
    # (when needed) is half-width.
    xp = _pad2d(x2d.astype(jnp.bfloat16), Mp, Kp)
    wp = _pad2d(w.astype(jnp.bfloat16), Kp, Np)
    bp = _pad2d(b.reshape(1, -1).astype(jnp.float32), 1, Np)

    cost = pl.CostEstimate(flops=2 * Mp * Kp * Np, transcendentals=0,
                           bytes_accessed=2 * (Mp * Kp + Kp * Np) + 4 * Mp * Np)

    if Kp == tk:
        out = pl.pallas_call(
            _linear_kernel_1k,
            grid=(Mp // tm, Np // tn),
            in_specs=[
                pl.BlockSpec((tm, Kp), lambda i, j: (i, 0)),
                pl.BlockSpec((Kp, tn), lambda i, j: (0, j)),
                pl.BlockSpec((1, tn), lambda i, j: (0, j)),
            ],
            out_specs=pl.BlockSpec((tm, tn), lambda i, j: (i, j)),
            out_shape=jax.ShapeDtypeStruct((Mp, Np), out_dtype),
            compiler_params=pltpu.CompilerParams(
                dimension_semantics=("parallel", "parallel"),
                vmem_limit_bytes=_VMEM_LIMIT),
            cost_estimate=cost,
        )(xp, wp, bp)
    else:
        out = pl.pallas_call(
            _linear_kernel_acc,
            grid=(Mp // tm, Np // tn, Kp // tk),
            in_specs=[
                pl.BlockSpec((tm, tk), lambda i, j, k: (i, k)),
                pl.BlockSpec((tk, tn), lambda i, j, k: (k, j)),
                pl.BlockSpec((1, tn), lambda i, j, k: (0, j)),
            ],
            out_specs=pl.BlockSpec((tm, tn), lambda i, j, k: (i, j)),
            out_shape=jax.ShapeDtypeStruct((Mp, Np), out_dtype),
            scratch_shapes=[pltpu.VMEM((tm, tn), jnp.float32)],
            compiler_params=pltpu.CompilerParams(
                dimension_semantics=("parallel", "parallel", "arbitrary"),
                vmem_limit_bytes=_VMEM_LIMIT),
            cost_estimate=cost,
        )(xp, wp, bp)
    return out[:M, :Dout]


# ---------------------------------------------------------------------------
# Deformable-attention core kernel
#   grid = (batch, Lq-tiles); value (Len_pad, C) resident per batch (bf16),
#   padded per level so level slices are aligned and roll-based corner placement
#   has index space; per-(head, level) one-hot sampling matrix S @ value slab.
# ---------------------------------------------------------------------------

def _deform_core_kernel(value_ref, lpa_ref, out_ref, *,
                        spatial_shapes, level_blocks, level_starts,
                        level_pad_front, H, L, P, Dh, s_dtype):
    TQ = out_ref.shape[0]
    LP = L * P
    HLP = H * LP

    lpa = lpa_ref[...]                              # (TQ, 3*HLP) f32
    locx_all = lpa[:, 0:HLP]
    locy_all = lpa[:, HLP:2 * HLP]
    logits_all = lpa[:, 2 * HLP:3 * HLP]

    zero = jnp.zeros((), s_dtype)

    for h in range(H):
        # softmax over this head's L*P samples; reciprocal on the EUP slot.
        lg = logits_all[:, h * LP:(h + 1) * LP]
        m = jnp.max(lg, axis=-1, keepdims=True)
        e = jnp.exp(lg - m)
        attn_h = e * pl.reciprocal(jnp.sum(e, axis=-1, keepdims=True), approx=True)

        acc = jnp.zeros((TQ, Dh), jnp.float32)

        for l in range(L):
            Hl, Wl = spatial_shapes[l]
            blk = level_blocks[l]
            start = level_starts[l]
            padf = level_pad_front[l]

            base_col = h * LP + l * P
            # grid_sample(align_corners=False) pixel mapping: loc*size - 0.5, zero pad.
            x = locx_all[:, base_col:base_col + P] * float(Wl) - 0.5   # (TQ, P)
            y = locy_all[:, base_col:base_col + P] * float(Hl) - 0.5
            a_l = attn_h[:, l * P:(l + 1) * P]                         # (TQ, P)

            x0 = jnp.floor(x)
            y0 = jnp.floor(y)
            lx = x - x0
            ly = y - y0
            x0i = x0.astype(jnp.int32)
            y0i = y0.astype(jnp.int32)

            # Per-corner (bilinear * attention) weights with zero-padding validity
            # folded in.  Narrow (TQ, P) fp32 math.
            in_x0 = (x0i >= 0) & (x0i < Wl)
            in_x1 = (x0i + 1 >= 0) & (x0i + 1 < Wl)
            in_y0 = (y0i >= 0) & (y0i < Hl)
            in_y1 = (y0i + 1 >= 0) & (y0i + 1 < Hl)
            cw00 = jnp.where(in_x0 & in_y0, (1.0 - lx) * (1.0 - ly) * a_l, 0.0).astype(s_dtype)
            cw10 = jnp.where(in_x1 & in_y0, lx * (1.0 - ly) * a_l, 0.0).astype(s_dtype)
            cw01 = jnp.where(in_x0 & in_y1, (1.0 - lx) * ly * a_l, 0.0).astype(s_dtype)
            cw11 = jnp.where(in_x1 & in_y1, lx * ly * a_l, 0.0).astype(s_dtype)

            # Flat (row-major) index of the (0,0) corner inside this level's padded
            # block.  Because padf >= Wl+1, base_idx >= 0 whenever ANY corner is in
            # bounds, so no valid contribution is lost.
            base_idx = y0i * Wl + x0i + padf                           # (TQ, P) int32
            col_ids = lax.broadcasted_iota(jnp.int32, (TQ, blk), 1)

            # TODO(synk): chunk the blk (column) axis for DETR-scale levels (HW ~ 15k)
            # so S stays register-resident and empty chunks can be skipped.
            S = jnp.zeros((TQ, blk), s_dtype)
            for p in range(P):
                hit = col_ids == base_idx[:, p:p + 1]   # ONE compare per point
                c00 = jnp.where(hit, cw00[:, p:p + 1], zero)
                c10 = jnp.where(hit, cw10[:, p:p + 1], zero)
                c01 = jnp.where(hit, cw01[:, p:p + 1], zero)
                c11 = jnp.where(hit, cw11[:, p:p + 1], zero)
                # +x / +y / +x+y corners placed via XLU rolls (targets base+1, base+Wl,
                # base+Wl+1 in the flat layout).  Invalid corners have zero weight, so
                # any wrap-around column receives nothing.
                S = S + c00
                S = S + pltpu.roll(c10, shift=1, axis=1)
                S = S + pltpu.roll(c01, shift=Wl, axis=1)
                S = S + pltpu.roll(c11, shift=Wl + 1, axis=1)

            # Aligned per-level row slice (level blocks are 128-row multiples).
            v_lh = value_ref[start:start + blk, h * Dh:(h + 1) * Dh]   # (blk, Dh) bf16
            acc = acc + jnp.dot(S.astype(jnp.bfloat16), v_lh,
                                preferred_element_type=jnp.float32)

        out_ref[:, h * Dh:(h + 1) * Dh] = acc.astype(out_ref.dtype)


# ---------------------------------------------------------------------------
# Parameters (deterministic, mirrors MSDeformAttn._reset_parameters)
# ---------------------------------------------------------------------------

def init_params(key, d_model, n_levels, n_heads, n_points):
    k_value, k_out = jax.random.split(key, 2)

    def xavier_uniform(k, fan_in, fan_out):
        lim = math.sqrt(6.0 / (fan_in + fan_out))
        return jax.random.uniform(k, (fan_in, fan_out), jnp.float32, -lim, lim)

    thetas = jnp.arange(n_heads, dtype=jnp.float32) * (2.0 * math.pi / n_heads)
    grid_init = jnp.stack([jnp.cos(thetas), jnp.sin(thetas)], -1)
    grid_init = grid_init / jnp.max(jnp.abs(grid_init), axis=-1, keepdims=True)
    grid_init = jnp.tile(grid_init.reshape(n_heads, 1, 1, 2),
                         (1, n_levels, n_points, 1))
    scale = jnp.arange(1, n_points + 1, dtype=jnp.float32).reshape(1, 1, n_points, 1)
    grid_init = grid_init * scale

    return {
        "offs_w": jnp.zeros((d_model, n_heads * n_levels * n_points * 2), jnp.float32),
        "offs_b": grid_init.reshape(-1),
        "attn_w": jnp.zeros((d_model, n_heads * n_levels * n_points), jnp.float32),
        "attn_b": jnp.zeros((n_heads * n_levels * n_points,), jnp.float32),
        "value_w": xavier_uniform(k_value, d_model, d_model),
        "value_b": jnp.zeros((d_model,), jnp.float32),
        "out_w": xavier_uniform(k_out, d_model, d_model),
        "out_b": jnp.zeros((d_model,), jnp.float32),
    }


# ---------------------------------------------------------------------------
# Forward pass
# ---------------------------------------------------------------------------

def ms_deform_attn_forward(params, query, reference_points, input_flatten,
                           spatial_shapes, *, n_heads, n_levels, n_points,
                           input_padding_mask=None):
    N, Lq, C = query.shape
    _, Len_in, _ = input_flatten.shape
    H, L, P = n_heads, n_levels, n_points
    Dh = C // H
    LP = L * P
    HLP = H * LP
    spatial_shapes = tuple((int(h), int(w)) for h, w in spatial_shapes)
    assert sum(h * w for h, w in spatial_shapes) == Len_in

    # ---- per-level padded value layout (roll index space + aligned slices) ----
    level_pad_front, level_blocks, level_starts = [], [], []
    pos = 0
    for (Hl, Wl) in spatial_shapes:
        HW = Hl * Wl
        pf = Wl + 1                                  # index space for roll-based corners
        blk = _ceil_to(pf + HW, 128)                 # aligned rows, lane-dense S width
        level_pad_front.append(pf)
        level_blocks.append(blk)
        level_starts.append(pos)
        pos += blk
    Len_pad = pos

    # ---- value projection (bf16 MXU matmul, bf16 output) ----
    value = linear(input_flatten.reshape(N * Len_in, C),
                   params["value_w"], params["value_b"],
                   out_dtype=jnp.bfloat16).reshape(N, Len_in, C)
    if input_padding_mask is not None:
        value = jnp.where(input_padding_mask[..., None], 0.0, value)

    segs = []
    off = 0
    for (Hl, Wl), pf, blk in zip(spatial_shapes, level_pad_front, level_blocks):
        HW = Hl * Wl
        seg = value[:, off:off + HW, :]
        segs.append(jnp.pad(seg, ((0, 0), (pf, blk - pf - HW), (0, 0))))
        off += HW
    value_p = jnp.concatenate(segs, axis=1)          # (N, Len_pad, C) bf16

    # ---- fused sampling_offsets + attention_weights projection (one matmul) ----
    sa_w = jnp.concatenate([params["offs_w"], params["attn_w"]], axis=1)
    sa_b = jnp.concatenate([params["offs_b"], params["attn_b"]], axis=0)
    sa = linear(query.reshape(N * Lq, C), sa_w, sa_b)            # (N*Lq, 3*HLP) f32
    sampling_offsets = sa[:, :2 * HLP].reshape(N, Lq, H, L, P, 2)
    attn_logits = sa[:, 2 * HLP:].reshape(N, Lq, HLP)

    # ---- sampling locations (cheap broadcast arithmetic, plain JAX glue) ----
    spatial_arr = jnp.asarray(spatial_shapes, jnp.float32)       # (L, 2) = (H_l, W_l)
    if reference_points.shape[-1] == 2:
        offset_normalizer = jnp.stack([spatial_arr[:, 1], spatial_arr[:, 0]], -1)
        sampling_locations = (reference_points[:, :, None, :, None, :]
                              + sampling_offsets
                              / offset_normalizer[None, None, None, :, None, :])
    elif reference_points.shape[-1] == 4:
        sampling_locations = (reference_points[:, :, None, :, None, :2]
                              + sampling_offsets / P
                              * reference_points[:, :, None, :, None, 2:] * 0.5)
    else:
        raise ValueError("Last dim of reference_points must be 2 or 4")

    # ---- pack [loc_x | loc_y | attn_logits] lane-dense: (N, Lq, 3*H*L*P) ----
    locx = sampling_locations[..., 0].reshape(N, Lq, HLP)
    locy = sampling_locations[..., 1].reshape(N, Lq, HLP)
    lpa = jnp.concatenate([locx, locy, attn_logits], axis=-1).astype(jnp.float32)

    # ---- Lq tiling ----
    TQ = min(128, _ceil_to(Lq, 8))
    Lq_pad = _ceil_to(Lq, TQ)
    if Lq_pad != Lq:
        lpa = jnp.pad(lpa, ((0, 0), (0, Lq_pad - Lq), (0, 0)))

    kernel = functools.partial(
        _deform_core_kernel,
        spatial_shapes=spatial_shapes,
        level_blocks=tuple(level_blocks),
        level_starts=tuple(level_starts),
        level_pad_front=tuple(level_pad_front),
        H=H, L=L, P=P, Dh=Dh, s_dtype=_S_DTYPE)

    core_flops = 2 * N * H * Lq_pad * Len_pad * Dh + 10 * N * H * Lq_pad * Len_pad * P
    core_bytes = (N * Len_pad * C * 2) + (N * Lq_pad * 3 * HLP * 4) + (N * Lq_pad * C * 4)

    core_out = pl.pallas_call(
        kernel,
        grid=(N, Lq_pad // TQ),
        in_specs=[
            # value block is constant across the q axis -> fetched once per batch element
            pl.BlockSpec((None, Len_pad, C), lambda n, q: (n, 0, 0)),
            pl.BlockSpec((None, TQ, 3 * HLP), lambda n, q: (n, q, 0)),
        ],
        out_specs=pl.BlockSpec((None, TQ, C), lambda n, q: (n, q, 0)),
        out_shape=jax.ShapeDtypeStruct((N, Lq_pad, C), jnp.float32),
        compiler_params=pltpu.CompilerParams(
            dimension_semantics=("parallel", "parallel"),
            vmem_limit_bytes=_VMEM_LIMIT),
        cost_estimate=pl.CostEstimate(
            flops=int(core_flops),
            transcendentals=int(N * Lq_pad * H * LP),
            bytes_accessed=int(core_bytes)),
    )(value_p, lpa)

    core_out = core_out[:, :Lq, :]                               # (N, Lq, C) lane-dense

    output = linear(core_out.reshape(N * Lq, C),
                    params["out_w"], params["out_b"]).reshape(N, Lq, C)
    return output


# ---------------------------------------------------------------------------
# Pure-JAX reference (mirrors ms_deform_attn_core_pytorch) for a sanity check
# ---------------------------------------------------------------------------

def reference_forward(params, query, reference_points, input_flatten,
                      spatial_shapes, *, n_heads, n_levels, n_points,
                      input_padding_mask=None):
    N, Lq, C = query.shape
    _, Len_in, _ = input_flatten.shape
    H, L, P = n_heads, n_levels, n_points
    Dh = C // H
    level_start = [0]
    for (hh, ww) in spatial_shapes[:-1]:
        level_start.append(level_start[-1] + hh * ww)

    value = input_flatten @ params["value_w"] + params["value_b"]
    if input_padding_mask is not None:
        value = jnp.where(input_padding_mask[..., None], 0.0, value)
    off = (query @ params["offs_w"] + params["offs_b"]).reshape(N, Lq, H, L, P, 2)
    logits = (query @ params["attn_w"] + params["attn_b"]).reshape(N, Lq, H, L * P)
    attn = jax.nn.softmax(logits, axis=-1).reshape(N, Lq, H, L, P)

    spatial_arr = jnp.asarray(spatial_shapes, jnp.float32)
    if reference_points.shape[-1] == 2:
        normalizer = jnp.stack([spatial_arr[:, 1], spatial_arr[:, 0]], -1)
        loc = (reference_points[:, :, None, :, None, :]
               + off / normalizer[None, None, None, :, None, :])
    else:
        loc = (reference_points[:, :, None, :, None, :2]
               + off / P * reference_points[:, :, None, :, None, 2:] * 0.5)

    value_h = value.reshape(N, Len_in, H, Dh)
    out = jnp.zeros((N, Lq, H, Dh), jnp.float32)
    for l, (Hl, Wl) in enumerate(spatial_shapes):
        HW = Hl * Wl
        v_l = value_h[:, level_start[l]:level_start[l] + HW]
        x = loc[:, :, :, l, :, 0] * Wl - 0.5
        y = loc[:, :, :, l, :, 1] * Hl - 0.5
        x0 = jnp.floor(x)
        y0 = jnp.floor(y)
        lx = x - x0
        ly = y - y0
        x0i = x0.astype(jnp.int32)
        y0i = y0.astype(jnp.int32)
        a_l = attn[:, :, :, l, :]
        for dx, dy, w in ((0, 0, (1 - lx) * (1 - ly)), (1, 0, lx * (1 - ly)),
                          (0, 1, (1 - lx) * ly), (1, 1, lx * ly)):
            xc = x0i + dx
            yc = y0i + dy
            valid = (xc >= 0) & (xc < Wl) & (yc >= 0) & (yc < Hl)
            idx = jnp.clip(yc, 0, Hl - 1) * Wl + jnp.clip(xc, 0, Wl - 1)   # (N,Lq,H,P)
            wt = jnp.where(valid, w * a_l, 0.0)
            idx_t = idx.transpose(0, 1, 3, 2).reshape(N, Lq * P, H)
            g = jnp.take_along_axis(v_l, idx_t[..., None], axis=1)
            g = g.reshape(N, Lq, P, H, Dh)
            wt_t = wt.transpose(0, 1, 3, 2)
            out = out + jnp.sum(wt_t[..., None] * g, axis=2)
    out = out.reshape(N, Lq, C)
    return out @ params["out_w"] + params["out_b"]


# ---------------------------------------------------------------------------
# Demo
# ---------------------------------------------------------------------------

if __name__ == "__main__":
    d_model, n_levels, n_heads, n_points = 32, 2, 4, 2
    spatial_shapes = ((8, 8), (4, 4))                 # (H_l, W_l) per level
    N, Lq = 2, 8
    Len_in = sum(h * w for h, w in spatial_shapes)    # 80

    key = jax.random.PRNGKey(0)
    k_p, k_q, k_f, k_r, k_w1, k_w2 = jax.random.split(key, 6)

    params = init_params(k_p, d_model, n_levels, n_heads, n_points)
    # small perturbation so sampling offsets / attention depend on the query
    params["offs_w"] = params["offs_w"] + 0.1 * jax.random.normal(
        k_w1, params["offs_w"].shape, jnp.float32)
    params["attn_w"] = params["attn_w"] + 0.1 * jax.random.normal(
        k_w2, params["attn_w"].shape, jnp.float32)

    query = jax.random.normal(k_q, (N, Lq, d_model), jnp.float32)
    input_flatten = jax.random.normal(k_f, (N, Len_in, d_model), jnp.float32)
    reference_points = jax.random.uniform(k_r, (N, Lq, n_levels, 2), jnp.float32)

    out = ms_deform_attn_forward(
        params, query, reference_points, input_flatten, spatial_shapes,
        n_heads=n_heads, n_levels=n_levels, n_points=n_points,
        input_padding_mask=None)
    jax.block_until_ready(out)

    assert out.shape == (N, Lq, d_model)
    assert bool(jnp.all(jnp.isfinite(out)))

    ref = reference_forward(
        params, query, reference_points, input_flatten, spatial_shapes,
        n_heads=n_heads, n_levels=n_levels, n_points=n_points,
        input_padding_mask=None)
    err = float(jnp.max(jnp.abs(out - ref)))
    scale = float(jnp.max(jnp.abs(ref))) + 1.0
    assert err < 5e-2 * scale, f"mismatch vs reference: max err {err}, scale {scale}"

    print("KERNEL_OK")
</pallas_src>

<mosaic_0001>
module attributes {stable_mosaic.version = 11 : i64} {
  func.func @_linear_kernel_1k(%arg0: i32, %arg1: i32, %arg2: memref<160x128xbf16, #tpu.memory_space<vmem>>, %arg3: memref<128x128xbf16, #tpu.memory_space<vmem>>, %arg4: memref<1x128xf32, #tpu.memory_space<vmem>>, %arg5: memref<160x128xbf16, #tpu.memory_space<vmem>>) attributes {dimension_semantics = [#tpu.dimension_semantics<parallel>, #tpu.dimension_semantics<parallel>], iteration_bounds = array<i64: 1, 1>, scalar_prefetch = 0 : i64, scratch_operands = 0 : i64, tpu.core_type = #tpu.core_type<tc>, window_params = [{transform_indices = @transform_0, window_bounds = array<i64: 160, 128>}, {transform_indices = @transform_1, window_bounds = array<i64: 128, 128>}, {transform_indices = @transform_2, window_bounds = array<i64: 1, 128>}, {transform_indices = @transform_3, window_bounds = array<i64: 160, 128>}]} {
    %c0 = arith.constant 0 : index
    %c0_0 = arith.constant 0 : index
    %0 = vector.load %arg2[%c0, %c0_0] : memref<160x128xbf16, #tpu.memory_space<vmem>>, vector<160x128xbf16>
    %c0_1 = arith.constant 0 : index
    %c0_2 = arith.constant 0 : index
    %1 = vector.load %arg3[%c0_1, %c0_2] : memref<128x128xbf16, #tpu.memory_space<vmem>>, vector<128x128xbf16>
    %cst = arith.constant dense<0.000000e+00> : vector<160x128xf32>
    %2 = tpu.matmul %0, %1, %cst {dimension_numbers = #tpu.dot_dimension_numbers<[1], [0], [0], [1], [0, 0, 1, 1], [], []>} : vector<160x128xbf16>, vector<128x128xbf16>, vector<160x128xf32> -> vector<160x128xf32>
    %c0_3 = arith.constant 0 : index
    %c0_4 = arith.constant 0 : index
    %3 = vector.load %arg4[%c0_3, %c0_4] : memref<1x128xf32, #tpu.memory_space<vmem>>, vector<1x128xf32>
    %4 = vector.broadcast %3 : vector<1x128xf32> to vector<160x128xf32>
    %5 = arith.addf %2, %4 : vector<160x128xf32>
    %6 = arith.truncf %5 : vector<160x128xf32> to vector<160x128xbf16>
    %c0_5 = arith.constant 0 : index
    %c0_6 = arith.constant 0 : index
    %7 = vector.load %arg5[%c0_5, %c0_6] : memref<160x128xbf16, #tpu.memory_space<vmem>>, vector<160x128xbf16>
    tpu.vector_store %arg5[%c0_5, %c0_6], %6 {strides = array<i32>} : memref<160x128xbf16, #tpu.memory_space<vmem>>, vector<160x128xbf16>,
    return
  }
  func.func @transform_0(%arg0: i32, %arg1: i32) -> (i32, i32) {
    %c0_i32 = arith.constant 0 : i32
    %c0_i32_0 = arith.constant 0 : i32
    return %arg0, %c0_i32 : i32, i32
  }
  func.func @transform_1(%arg0: i32, %arg1: i32) -> (i32, i32) {
    %c0_i32 = arith.constant 0 : i32
    %c0_i32_0 = arith.constant 0 : i32
    return %c0_i32, %arg1 : i32, i32
  }
  func.func @transform_2(%arg0: i32, %arg1: i32) -> (i32, i32) {
    %c0_i32 = arith.constant 0 : i32
    %c0_i32_0 = arith.constant 0 : i32
    return %c0_i32, %arg1 : i32, i32
  }
  func.func @transform_3(%arg0: i32, %arg1: i32) -> (i32, i32) {
    %c0_i32 = arith.constant 0 : i32
    return %arg0, %arg1 : i32, i32
  }
}

</mosaic_0001>

<bundles_post_ra>
// kernel: tpu_custom_call.1
= control target key start
LH: loop header
LB: loop body
LE: loop exit
PB: predicated region body
PF: predicated region fallthrough
CT: control target
= control target key end

     0   :  { %8 = vsyncpa [#allocation3], 0  ;;  %s617_s0 = inlined_call_operand.hbm [shape: bf16[160,128], index: 0, kind: input, shape index: {}]   ;;  %s618_s1 = inlined_call_operand.hbm [shape: bf16[128,128], index: 1, kind: input, shape index: {}]   ;;  %s619_s2 = inlined_call_operand.vmem [shape: f32[1,128], index: 2, kind: input, shape index: {}]   ;;  %s620_s3 = inlined_call_operand.hbm [shape: bf16[160,128], index: 3, kind: output, shape index: {}]  }
   0x1   :  { %9 = vsyncpa [#allocation6], 0 }
   0x2   :  { %10 = vsyncpa [#allocation4], 0  ;;  %s15_s14 = sshll.u32 %s617_s0, 4  ;;  %s571_s15 = smov [#allocation2]   ;;  %s16_s14 = int_to_ptr.hbm [resolvable:$true] %s15_s14 }
   0x3   :  { %s17_s16 = sshll.u32 %s571_s15, 4  ;;  %s28_s19 = sshll.u32 %s618_s1, 4  ;;  %s18_s16 = int_to_ptr.vmem [resolvable:$true] %s17_s16  ;;  %s29_s19 = int_to_ptr.hbm [resolvable:$true] %s28_s19 }
   0x4   :  { %s572_s20 = smov 64   ;;  %s573_s21 = smov 4  }
   0x5   :  { %23 = dma.hbm_to_vmem [thread:$0]  %s16_s14, 1280, %s18_s16, [#allocation3], %s572_s20, %s572_s20, %s573_s21  }
   0x6   :  { %s574_s22 = smov [#allocation5]  }
   0x7   :  { %s30_s23 = sshll.u32 %s574_s22, 4  ;;  %s31_s23 = int_to_ptr.vmem [resolvable:$true] %s30_s23 }
   0x8   :  { %36 = dma.hbm_to_vmem [thread:$0]  %s29_s19, 1024, %s31_s23, [#allocation6], %s572_s20, %s572_s20, %s573_s21  }
   0x9   :  { %565 = dma.done.wait [#allocation3], 1280  }
   0xa   :  { %566 = vsyncadd [#allocation3], 4294966016 }
   0xb   :  { %567 = dma.done.wait [#allocation6], 1024  }
   0xc   :  { %568 = vsyncadd [#allocation6], 4294966272  ;;  %v403_v0 = vld [vmem:[#allocation5 + $0x38] sm:$0xff]  ;;  %v402_v1 = vld [vmem:[#allocation5 + $0x30] sm:$0xff]  ;;  %s300_s27 = sshll.u32 %s620_s3, 4  ;;  %s301_s27 = int_to_ptr.hbm [resolvable:$true] %s300_s27 }
   0xd   :  { %464 = vmatpush.bf16.msra.mxu2 %v403_v0  ;;  %465 = vmatpush.bf16.msra.mxu3 %v403_v0  ;;  %v401_v2 = vld [vmem:[#allocation5 + $0x28] sm:$0xff]  ;;  %v400_v3 = vld [vmem:[#allocation5 + $0x20] sm:$0xff]  ;;  %v399_v4 = vld [vmem:[#allocation5 + $0x18] sm:$0xff] }
   0xe   :  { %195 = vmatpush.bf16.msra.mxu0 %v403_v0  ;;  %463 = vmatpush.bf16.msra.mxu1 %v403_v0  ;;  %v398_v5 = vld [vmem:[#allocation5 + $0x10] sm:$0xff]  ;;  %v397_v6 = vld [vmem:[#allocation5 + $0x8] sm:$0xff]  ;;  %v396_v7 = vld [vmem:[#allocation5] sm:$0xff] }
   0xf   :  { %v390_v8 = vld [vmem:[#allocation2 + $0x20] sm:$0xff]  ;;  %v393_v9 = vld [vmem:[#allocation2 + $0x38] sm:$0xff]  ;;  %v388_v11 = vld [vmem:[#allocation2 + $0x10] sm:$0xff] }
  0x10   :  { %v386_v10 = vld [vmem:[#allocation2] sm:$0xff]  ;;  %v391_v12 = vld [vmem:[#allocation2 + $0x28] sm:$0xff]  ;;  %v389_v15 = vld [vmem:[#allocation2 + $0x18] sm:$0xff] }
  0x11   :  { %467 = vmatpush.bf16.msra.mxu2 %v402_v1  ;;  %468 = vmatpush.bf16.msra.mxu3 %v402_v1  ;;  %v394_v13 = vld [vmem:[#allocation2 + $0x40] sm:$0xff]  ;;  %v387_v14 = vld [vmem:[#allocation2 + $0x8] sm:$0xff]  ;;  %v392_v16 = vld [vmem:[#allocation2 + $0x30] sm:$0xff] }
  0x12   :  { %196 = vmatpush.bf16.msra.mxu0 %v402_v1  ;;  %466 = vmatpush.bf16.msra.mxu1 %v402_v1  ;;  %v395_v17 = vld [vmem:[#allocation2 + $0x48] sm:$0xff]  ;;  %v492_v20 = vld [vmem:[%s619_s2] ss:$0 sm:$0xff]  ;;  %s575_s2 = smov [#allocation7]  }
  0x13   :  { %s298_s24 = sshll.u32 %s575_s2, 4  ;;  %s299_s24 = int_to_ptr.vmem [resolvable:$true] %s298_s24 }
  0x15   :  { %470 = vmatpush.bf16.msra.mxu2 %v401_v2  ;;  %471 = vmatpush.bf16.msra.mxu3 %v401_v2 }
  0x16   :  { %197 = vmatpush.bf16.msra.mxu0 %v401_v2  ;;  %469 = vmatpush.bf16.msra.mxu1 %v401_v2 }
  0x19   :  { %473 = vmatpush.bf16.msra.mxu2 %v400_v3  ;;  %474 = vmatpush.bf16.msra.mxu3 %v400_v3 }
  0x1a   :  { %198 = vmatpush.bf16.msra.mxu0 %v400_v3  ;;  %472 = vmatpush.bf16.msra.mxu1 %v400_v3 }
  0x1d   :  { %476 = vmatpush.bf16.msra.mxu2 %v399_v4  ;;  %477 = vmatpush.bf16.msra.mxu3 %v399_v4 }
  0x1e   :  { %199 = vmatpush.bf16.msra.mxu0 %v399_v4  ;;  %475 = vmatpush.bf16.msra.mxu1 %v399_v4 }
  0x21   :  { %479 = vmatpush.bf16.msra.mxu2 %v398_v5  ;;  %480 = vmatpush.bf16.msra.mxu3 %v398_v5 }
  0x22   :  { %200 = vmatpush.bf16.msra.mxu0 %v398_v5  ;;  %478 = vmatpush.bf16.msra.mxu1 %v398_v5 }
  0x25   :  { %482 = vmatpush.bf16.msra.mxu2 %v397_v6  ;;  %483 = vmatpush.bf16.msra.mxu3 %v397_v6 }
  0x26   :  { %201 = vmatpush.bf16.msra.mxu0 %v397_v6  ;;  %481 = vmatpush.bf16.msra.mxu1 %v397_v6 }
  0x29   :  { %485 = vmatpush.bf16.msra.mxu2 %v396_v7  ;;  %486 = vmatpush.bf16.msra.mxu3 %v396_v7 }
  0x2a   :  { %202 = vmatpush.bf16.msra.mxu0 %v396_v7  ;;  %484 = vmatpush.bf16.msra.mxu1 %v396_v7 }
  0x2c   :  { %223 = vmatmul.bf16.vlgmr.msra.gmra.mxu2 %v390_v8  ;;  %238 = vmatmul.bf16.vlgmr.msra.gmra.mxu3 %v393_v9 }
  0x2d   :  { %203 = vmatmul.bf16.vlgmr.msra.gmra.mxu0 %v386_v10  ;;  %213 = vmatmul.bf16.vlgmr.msra.gmra.mxu1 %v388_v11 }
  0x3c   :  { %228 = vmatmul.bf16.gmra.mxu2 %v391_v12  ;;  %243 = vmatmul.bf16.gmra.mxu3 %v394_v13 }
  0x3d   :  { %208 = vmatmul.bf16.gmra.mxu0 %v387_v14  ;;  %218 = vmatmul.bf16.gmra.mxu1 %v389_v15 }
  0x4c   :  { %233 = vmatmul.bf16.gmra.mxu2 %v392_v16  ;;  %248 = vmatmul.bf16.gmra.mxu3 %v395_v17 }
  0xaa   :  { %v204_v18 = vpop.f32.mrf.mxu0  ;;  %v214_v19 = vpop.f32.mrf.mxu1 }
  0xab   :  { %v205_v23 = vadd.f32 %v492_v20, %v204_v18  ;;  %v215_v24 = vadd.f32 %v492_v20, %v214_v19 }
  0xaf   :  { %v224_v21 = vpop.f32.mrf.mxu2  ;;  %v239_v22 = vpop.f32.mrf.mxu3 }
  0xb0   :  { %v225_v33 = vadd.f32 %v492_v20, %v224_v21  ;;  %v240_v34 = vadd.f32 %v492_v20, %v239_v22 }
  0xb2   :  { %v206_v25 = vpop.f32.mrf.mxu0  ;;  %v216_v26 = vpop.f32.mrf.mxu1 }
  0xb3   :  { %v207_v27 = vadd.f32 %v492_v20, %v206_v25  ;;  %v217_v28 = vadd.f32 %v492_v20, %v216_v26 }
  0xb5   :  { %v407_v29 = vpack.c.bf16 %v207_v27, %v205_v23  ;;  %v417_v30 = vpack.c.bf16 %v217_v28, %v215_v24 }
  0xb7   :  { %v226_v31 = vpop.f32.mrf.mxu2  ;;  %v241_v32 = vpop.f32.mrf.mxu3  ;;  %408 = vst [vmem:[#allocation7] sm:$0xff] %v407_v29  }
  0xb8   :  { %v227_v35 = vadd.f32 %v492_v20, %v226_v31  ;;  %v242_v36 = vadd.f32 %v492_v20, %v241_v32  ;;  %455 = vst [vmem:[#allocation7 + $0x10] sm:$0xff] %v417_v30  }
  0xba   :  { %v427_v37 = vpack.c.bf16 %v227_v35, %v225_v33  ;;  %v442_v38 = vpack.c.bf16 %v242_v36, %v240_v34  ;;  %v209_v39 = vpop.f32.mrf.mxu0  ;;  %v219_v40 = vpop.f32.mrf.mxu1 }
  0xbb   :  { %v210_v43 = vadd.f32 %v492_v20, %v209_v39  ;;  %v220_v44 = vadd.f32 %v492_v20, %v219_v40 }
  0xbc   :  { %457 = vst [vmem:[#allocation7 + $0x20] sm:$0xff] %v427_v37  }
  0xbd   :  { %460 = vst [vmem:[#allocation7 + $0x38] sm:$0xff] %v442_v38  }
  0xbf   :  { %v229_v41 = vpop.f32.mrf.mxu2  ;;  %v244_v42 = vpop.f32.mrf.mxu3 }
  0xc0   :  { %v230_v53 = vadd.f32 %v492_v20, %v229_v41  ;;  %v245_v54 = vadd.f32 %v492_v20, %v244_v42 }
  0xc2   :  { %v211_v45 = vpop.f32.mrf.mxu0  ;;  %v221_v46 = vpop.f32.mrf.mxu1 }
  0xc3   :  { %v212_v47 = vadd.f32 %v492_v20, %v211_v45  ;;  %v222_v48 = vadd.f32 %v492_v20, %v221_v46 }
  0xc5   :  { %v412_v49 = vpack.c.bf16 %v212_v47, %v210_v43  ;;  %v422_v50 = vpack.c.bf16 %v222_v48, %v220_v44 }
  0xc7   :  { %v231_v51 = vpop.f32.mrf.mxu2  ;;  %v246_v52 = vpop.f32.mrf.mxu3  ;;  %454 = vst [vmem:[#allocation7 + $0x8] sm:$0xff] %v412_v49  }
  0xc8   :  { %v232_v55 = vadd.f32 %v492_v20, %v231_v51  ;;  %v247_v56 = vadd.f32 %v492_v20, %v246_v52  ;;  %456 = vst [vmem:[#allocation7 + $0x18] sm:$0xff] %v422_v50  }
  0xca   :  { %v432_v57 = vpack.c.bf16 %v232_v55, %v230_v53  ;;  %v447_v58 = vpack.c.bf16 %v247_v56, %v245_v54 }
  0xcc   :  { %458 = vst [vmem:[#allocation7 + $0x28] sm:$0xff] %v432_v57  }
  0xcd   :  { %461 = vst [vmem:[#allocation7 + $0x40] sm:$0xff] %v447_v58  }
  0xcf   :  { %v234_v59 = vpop.f32.mrf.mxu2  ;;  %v249_v60 = vpop.f32.mrf.mxu3 }
  0xd0   :  { %v235_v63 = vadd.f32 %v492_v20, %v234_v59  ;;  %v250_v0 = vadd.f32 %v492_v20, %v249_v60 }
  0xd7   :  { %v236_v61 = vpop.f32.mrf.mxu2  ;;  %v251_v62 = vpop.f32.mrf.mxu3 }
  0xd8   :  { %v237_v1 = vadd.f32 %v492_v20, %v236_v61  ;;  %v252_v2 = vadd.f32 %v492_v20, %v251_v62 }
  0xda   :  { %v437_v3 = vpack.c.bf16 %v237_v1, %v235_v63  ;;  %v452_v4 = vpack.c.bf16 %v252_v2, %v250_v0 }
  0xdc   :  { %459 = vst [vmem:[#allocation7 + $0x30] sm:$0xff] %v437_v3  }
  0xdd   :  { %462 = vst [vmem:[#allocation7 + $0x48] sm:$0xff] %v452_v4  }
  0xde   :  { %306 = dma.vmem_to_hbm [thread:$0]  %s299_s24, 1280, %s301_s27, [#allocation4], %s572_s20, %s572_s20, %s573_s21  }
  0xdf   :  { %569 = dma.done.wait [#allocation4], 1280  }
  0xe0   :  { %570 = vsyncadd [#allocation4], 4294966016 }
  0xe1   :  { %311 = vsyncpa [#allocation3], 1 }
  0xe2   :  { %312 = vsyncpa [#allocation6], 1 }
  0xe3   :  { %313 = vsyncpa [#allocation4], 1 }

</bundles_post_ra>
